<compile_context>
chip_gen: v7x
topology: tpu7x:2x2x1
jax: 0.10.0
libtpu: 0.0.40
codegen_flags: <defaults>
</compile_context>

<pallas_src>
import functools
import math

import jax
import jax.numpy as jnp
from jax import lax
from jax.experimental import pallas as pl
from jax.experimental.pallas import tpu as pltpu


# -----------------------------------------------------------------------------
# Kernel 1: hoisted 1x1-conv projections (query / key / value), once per pixel.
# -----------------------------------------------------------------------------
def _proj_kernel(x_ref,                    # (1, C, TP) f32
                 wq_ref, bq_ref,           # (C8, C) bf16, (C8, 1) f32
                 wk_ref, bk_ref,           # (C8, C) bf16, (C8, 1) f32
                 wv_ref, bv_ref,           # (C,  C) bf16, (C,  1) f32
                 q_ref, k_ref, v_ref):     # (1, C8, TP) bf16 x2, (1, C, TP) bf16
    x = x_ref[0].astype(jnp.bfloat16)                                        # (C, TP)
    q = jnp.dot(wq_ref[...], x, preferred_element_type=jnp.float32) + bq_ref[...]
    k = jnp.dot(wk_ref[...], x, preferred_element_type=jnp.float32) + bk_ref[...]
    v = jnp.dot(wv_ref[...], x, preferred_element_type=jnp.float32) + bv_ref[...]
    q_ref[0] = q.astype(jnp.bfloat16)
    k_ref[0] = k.astype(jnp.bfloat16)
    v_ref[0] = v.astype(jnp.bfloat16)


# -----------------------------------------------------------------------------
# Kernel 2: flash-style position attention with online softmax.
# -----------------------------------------------------------------------------
def _attn_kernel(gamma_ref,                # SMEM (1, 1) f32
                 q_ref,                    # VMEM (1, C8, TQ) bf16
                 kt_ref,                   # VMEM (1, TK, C8) bf16 (spatial-major key)
                 v_ref,                    # VMEM (1, C, TK)  bf16
                 x_ref,                    # VMEM (1, C, TQ)  f32 (residual)
                 o_ref,                    # VMEM (1, C, TQ)  f32
                 m_sc, l_sc,               # VMEM (1, TQ) f32 online-softmax stats
                 acc_sc,                   # VMEM (C, TQ) f32 output accumulator
                 *, hw_valid, tk):
    ki = pl.program_id(2)
    nk = pl.num_programs(2)

    @pl.when(ki == 0)
    def _():
        m_sc[...] = jnp.full_like(m_sc, -jnp.inf)
        l_sc[...] = jnp.zeros_like(l_sc)
        acc_sc[...] = jnp.zeros_like(acc_sc)

    # energy^T[j, i] = sum_c k[c, j] * q[c, i]
    # Plain (TK, C8) @ (C8, TQ) matmul, bf16 operands, f32 accumulation.
    e_t = jnp.dot(kt_ref[0], q_ref[0], preferred_element_type=jnp.float32)   # (TK, TQ)

    if hw_valid is not None:
        # Zero-padded spatial positions must not be attended to: mask keys to -inf.
        key_idx = ki * tk + lax.broadcasted_iota(jnp.int32, (e_t.shape[0], 1), 0)
        e_t = jnp.where(key_idx < hw_valid, e_t, -jnp.inf)

    # Online softmax over the key axis (axis 0 of e_t); stats are (1, TQ).
    m_prev = m_sc[...]
    m_new = jnp.maximum(m_prev, jnp.max(e_t, axis=0, keepdims=True))
    alpha = jnp.exp(m_prev - m_new)
    p = jnp.exp(e_t - m_new)        # f32 exp; bf16 exp is a v6e/v7x-only EUP option
    l_sc[...] = alpha * l_sc[...] + jnp.sum(p, axis=0, keepdims=True)
    contrib = jnp.dot(v_ref[0], p.astype(jnp.bfloat16),
                      preferred_element_type=jnp.float32)                    # (C, TQ)
    acc_sc[...] = alpha * acc_sc[...] + contrib
    m_sc[...] = m_new

    @pl.when(ki == nk - 1)
    def _():
        inv_l = pl.reciprocal(l_sc[...], approx=True)
        o_ref[0] = gamma_ref[0, 0] * (acc_sc[...] * inv_l) + x_ref[0]


# -----------------------------------------------------------------------------
# Wrapper: tiling, padding, projection pass, attention pass.
# -----------------------------------------------------------------------------
def _round_up(x, m):
    return ((x + m - 1) // m) * m


def _pick_tile(target, hw128):
    t = min(max(int(target), 128), hw128)
    return max(128, (t // 128) * 128)


def _est_attn_vmem(c, c8, tq, tk):
    """Rough VMEM footprint of the attention kernel (double-buffered pipeline)."""
    xin_out = 2 * 2 * (c * tq * 4)       # x tile + out tile (f32), 2 buffers each
    q_in = 2 * (c8 * tq * 2)
    k_in = 2 * (tk * c8 * 2)
    v_in = 2 * (c * tk * 2)
    scratch = c * tq * 4 + 2 * tq * 4
    tmp = tk * tq * 10                   # e_t + p (f32) and p (bf16) temporaries
    return xin_out + q_in + k_in + v_in + scratch + tmp


def position_attention_pallas(x_nchw, params, *, q_tile=1024, k_tile=512,
                              vmem_budget_bytes=40 * 1024 * 1024):
    """x_nchw: (N, C, H, W) float32.  params: dict of weights.  Returns (N, C, H, W)."""
    N, C, H, W = x_nchw.shape
    HW = H * W
    C8 = params["wq"].shape[1]

    # ---- spatial tiling: lane-dense (multiples of 128); pad HW so tiles divide ----
    hw128 = _round_up(HW, 128)
    TQ = _pick_tile(q_tile, hw128)
    TK = _pick_tile(k_tile, hw128)
    # Keep the footprint within ~40 MiB: safe on v7x (64 MiB physical VMEM);
    # v5e/v6e (128 MiB) could use larger tiles but one default must run everywhere.
    while _est_attn_vmem(C, C8, TQ, TK) > vmem_budget_bytes and max(TQ, TK) > 128:
        if TQ >= TK:
            TQ = max(128, (TQ // 2) // 128 * 128)
        else:
            TK = max(128, (TK // 2) // 128 * 128)
    HW_pad = _round_up(HW, math.lcm(TQ, TK))
    # v7x has 2 TensorCores: ensure the "parallel" grid axes provide >= 2 programs.
    if N * (HW_pad // TQ) < 2 and HW_pad % 256 == 0:
        TQ = HW_pad // 2
    n_q = HW_pad // TQ
    n_k = HW_pad // TK
    TP = TK                              # projection spatial tile (divides HW_pad)
    n_p = HW_pad // TP

    # ---- wrapper-side layout plumbing (reshape / zero-pad only) ----
    x_flat = x_nchw.reshape(N, C, HW).astype(jnp.float32)
    if HW_pad != HW:
        x_flat = jnp.pad(x_flat, ((0, 0), (0, 0), (0, HW_pad - HW)))

    gamma = params["gamma"].reshape(1, 1).astype(jnp.float32)
    # Conv2d-1x1 weights stored as (in, out); transpose to (out, in) so every
    # projection is a plain row-major matmul, and cast to bf16 for the MXU.
    wq = params["wq"].T.astype(jnp.bfloat16)
    wk = params["wk"].T.astype(jnp.bfloat16)
    wv = params["wv"].T.astype(jnp.bfloat16)
    bq = params["bq"].reshape(C8, 1).astype(jnp.float32)
    bk = params["bk"].reshape(C8, 1).astype(jnp.float32)
    bv = params["bv"].reshape(C, 1).astype(jnp.float32)

    # ---- pass 1: q/k/v projections, computed once per spatial position ----
    q_bf, k_bf, v_bf = pl.pallas_call(
        _proj_kernel,
        out_shape=(
            jax.ShapeDtypeStruct((N, C8, HW_pad), jnp.bfloat16),
            jax.ShapeDtypeStruct((N, C8, HW_pad), jnp.bfloat16),
            jax.ShapeDtypeStruct((N, C, HW_pad), jnp.bfloat16),
        ),
        grid_spec=pltpu.PrefetchScalarGridSpec(
            num_scalar_prefetch=0,
            grid=(N, n_p),
            in_specs=[
                pl.BlockSpec((1, C, TP), lambda n, p: (n, 0, p)),   # x tile
                pl.BlockSpec((C8, C), lambda n, p: (0, 0)),         # wq^T
                pl.BlockSpec((C8, 1), lambda n, p: (0, 0)),         # bq
                pl.BlockSpec((C8, C), lambda n, p: (0, 0)),         # wk^T
                pl.BlockSpec((C8, 1), lambda n, p: (0, 0)),         # bk
                pl.BlockSpec((C, C), lambda n, p: (0, 0)),          # wv^T
                pl.BlockSpec((C, 1), lambda n, p: (0, 0)),          # bv
            ],
            out_specs=[
                pl.BlockSpec((1, C8, TP), lambda n, p: (n, 0, p)),
                pl.BlockSpec((1, C8, TP), lambda n, p: (n, 0, p)),
                pl.BlockSpec((1, C, TP), lambda n, p: (n, 0, p)),
            ],
        ),
        compiler_params=pltpu.CompilerParams(
            dimension_semantics=("parallel", "parallel")),
    )(x_flat, wq, bq, wk, bk, wv, bv)

    # Key tensor in spatial-major layout so the in-kernel energy matmul needs no
    # per-step transpose; one small one-off XLA transpose of a bf16 (N,C8,HW) array.
    k_t = jnp.swapaxes(k_bf, 1, 2)                                   # (N, HW_pad, C8)

    # ---- pass 2: flash-style attention over grid (N, n_q, n_k) ----
    attn_kernel = functools.partial(
        _attn_kernel, hw_valid=(HW if HW_pad != HW else None), tk=TK)

    flops = 2 * N * HW_pad * HW_pad * (C8 + C)
    bytes_accessed = (N * HW_pad * (C8 * 2 + 2 * C * 4)
                      + N * n_q * HW_pad * (C8 + C) * 2)
    cost = pl.CostEstimate(flops=int(flops),
                           transcendentals=int(N * HW_pad * HW_pad),
                           bytes_accessed=int(bytes_accessed))

    out_flat = pl.pallas_call(
        attn_kernel,
        out_shape=jax.ShapeDtypeStruct((N, C, HW_pad), jnp.float32),
        grid_spec=pltpu.PrefetchScalarGridSpec(
            num_scalar_prefetch=0,
            grid=(N, n_q, n_k),
            in_specs=[
                pl.BlockSpec(memory_space=pltpu.MemorySpace.SMEM),         # gamma
                pl.BlockSpec((1, C8, TQ), lambda n, qi, ki: (n, 0, qi)),   # q
                pl.BlockSpec((1, TK, C8), lambda n, qi, ki: (n, ki, 0)),   # k^T
                pl.BlockSpec((1, C, TK), lambda n, qi, ki: (n, 0, ki)),    # v
                pl.BlockSpec((1, C, TQ), lambda n, qi, ki: (n, 0, qi)),    # x (residual)
            ],
            out_specs=pl.BlockSpec((1, C, TQ), lambda n, qi, ki: (n, 0, qi)),
            scratch_shapes=[
                pltpu.VMEM((1, TQ), jnp.float32),   # running max m
                pltpu.VMEM((1, TQ), jnp.float32),   # running sum l
                pltpu.VMEM((C, TQ), jnp.float32),   # output accumulator
            ],
        ),
        compiler_params=pltpu.CompilerParams(
            dimension_semantics=("parallel", "parallel", "arbitrary"),
            vmem_limit_bytes=48 * 1024 * 1024),
        cost_estimate=cost,
    )(gamma, q_bf, k_t, v_bf, x_flat)

    return out_flat[:, :, :HW].reshape(N, C, H, W)


# -----------------------------------------------------------------------------
# Pure-JAX f32 reference mirroring the PyTorch forward exactly (NCHW).
# -----------------------------------------------------------------------------
def _reference_jax(x_nchw, params):
    N, C, H, W = x_nchw.shape
    HW = H * W
    xf = x_nchw.reshape(N, C, HW)                                   # (N, C, HW)
    q = jnp.einsum("co,ncp->nop", params["wq"], xf) + params["bq"][None, :, None]
    k = jnp.einsum("co,ncp->nop", params["wk"], xf) + params["bk"][None, :, None]
    v = jnp.einsum("co,ncp->nop", params["wv"], xf) + params["bv"][None, :, None]
    energy = jnp.einsum("ncp,ncq->npq", q, k)                       # (N, HW, HW)
    att = jax.nn.softmax(energy, axis=-1)
    out = jnp.einsum("ncj,nij->nci", v, att)                        # (N, C, HW)
    out = out.reshape(N, C, H, W)
    return params["gamma"].reshape(()) * out + x_nchw


def make_params(key, in_channels):
    """Deterministic synthetic parameters with the shapes implied by __init__.
    Stored as (in, out) matmul weights (Conv2d 1x1 weight (out,in,1,1) transposed)."""
    C = in_channels
    C8 = C // 8
    k1, k2, k3, k4, k5, k6 = jax.random.split(key, 6)
    scale = 0.1
    return {
        "wq": scale * jax.random.normal(k1, (C, C8), jnp.float32),
        "bq": scale * jax.random.normal(k2, (C8,), jnp.float32),
        "wk": scale * jax.random.normal(k3, (C, C8), jnp.float32),
        "bk": scale * jax.random.normal(k4, (C8,), jnp.float32),
        "wv": scale * jax.random.normal(k5, (C, C), jnp.float32),
        "bv": scale * jax.random.normal(k6, (C,), jnp.float32),
        # nn.Parameter(torch.zeros(1)) in the original; use a nonzero value so the
        # attention path is actually exercised (still deterministic).
        "gamma": jnp.array([0.5], jnp.float32),
    }


if __name__ == "__main__":
    key = jax.random.PRNGKey(0)

    # Case 1: HW=64 -> padded to 128 (masked keys), default tiles.
    # Case 2: multiple Q and KV tiles -> exercises the online-softmax accumulation.
    # Case 3: non-128-divisible HW=240 -> pad + mask with multiple KV tiles.
    cases = [
        dict(N=2, C=32, H=8, W=8, q_tile=1024, k_tile=512),
        dict(N=1, C=16, H=16, W=16, q_tile=128, k_tile=128),
        dict(N=1, C=32, H=12, W=20, q_tile=128, k_tile=128),
    ]
    for i, cfg in enumerate(cases):
        kx, kp, key = jax.random.split(key, 3)
        N, C, H, W = cfg["N"], cfg["C"], cfg["H"], cfg["W"]
        x = jax.random.normal(kx, (N, C, H, W), jnp.float32)
        params = make_params(kp, C)

        out = position_attention_pallas(x, params,
                                        q_tile=cfg["q_tile"], k_tile=cfg["k_tile"])
        out = jax.block_until_ready(out)

        ref = _reference_jax(x, params)
        assert out.shape == (N, C, H, W)
        err = float(jnp.max(jnp.abs(out - ref)))
        # bf16 q/k/v storage + bf16 MXU operands (f32 accumulation) vs f32 reference.
        assert jnp.allclose(out, ref, atol=3e-2, rtol=3e-2), (i, err)

    print("KERNEL_OK")
</pallas_src>

<mosaic_0001>
module attributes {stable_mosaic.version = 11 : i64} {
  func.func @_proj_kernel(%arg0: i32, %arg1: i32, %arg2: memref<1x32x128xf32, #tpu.memory_space<vmem>>, %arg3: memref<4x32xbf16, #tpu.memory_space<vmem>>, %arg4: memref<4x1xf32, #tpu.memory_space<vmem>>, %arg5: memref<4x32xbf16, #tpu.memory_space<vmem>>, %arg6: memref<4x1xf32, #tpu.memory_space<vmem>>, %arg7: memref<32x32xbf16, #tpu.memory_space<vmem>>, %arg8: memref<32x1xf32, #tpu.memory_space<vmem>>, %arg9: memref<1x4x128xbf16, #tpu.memory_space<vmem>>, %arg10: memref<1x4x128xbf16, #tpu.memory_space<vmem>>, %arg11: memref<1x32x128xbf16, #tpu.memory_space<vmem>>) attributes {dimension_semantics = [#tpu.dimension_semantics<parallel>, #tpu.dimension_semantics<parallel>], iteration_bounds = array<i64: 2, 1>, scalar_prefetch = 0 : i64, scratch_operands = 0 : i64, tpu.core_type = #tpu.core_type<tc>, window_params = [{transform_indices = @transform_0, window_bounds = array<i64: 1, 32, 128>}, {pipeline_mode = #tpu.pipeline_mode<synchronous>, transform_indices = @transform_1, window_bounds = array<i64: 4, 32>}, {pipeline_mode = #tpu.pipeline_mode<synchronous>, transform_indices = @transform_2, window_bounds = array<i64: 4, 1>}, {pipeline_mode = #tpu.pipeline_mode<synchronous>, transform_indices = @transform_3, window_bounds = array<i64: 4, 32>}, {pipeline_mode = #tpu.pipeline_mode<synchronous>, transform_indices = @transform_4, window_bounds = array<i64: 4, 1>}, {pipeline_mode = #tpu.pipeline_mode<synchronous>, transform_indices = @transform_5, window_bounds = array<i64: 32, 32>}, {pipeline_mode = #tpu.pipeline_mode<synchronous>, transform_indices = @transform_6, window_bounds = array<i64: 32, 1>}, {transform_indices = @transform_7, window_bounds = array<i64: 1, 4, 128>}, {transform_indices = @transform_8, window_bounds = array<i64: 1, 4, 128>}, {transform_indices = @transform_9, window_bounds = array<i64: 1, 32, 128>}]} {
    %c0 = arith.constant 0 : index
    %c0_0 = arith.constant 0 : index
    %c0_1 = arith.constant 0 : index
    %0 = vector.load %arg2[%c0, %c0_0, %c0_1] : memref<1x32x128xf32, #tpu.memory_space<vmem>>, vector<1x32x128xf32>
    %1 = vector.shape_cast %0 : vector<1x32x128xf32> to vector<32x128xf32>
    %2 = arith.truncf %1 : vector<32x128xf32> to vector<32x128xbf16>
    %c0_2 = arith.constant 0 : index
    %c0_3 = arith.constant 0 : index
    %3 = vector.load %arg3[%c0_2, %c0_3] : memref<4x32xbf16, #tpu.memory_space<vmem>>, vector<4x32xbf16>
    %cst = arith.constant dense<0.000000e+00> : vector<4x128xf32>
    %4 = tpu.matmul %3, %2, %cst {dimension_numbers = #tpu.dot_dimension_numbers<[1], [0], [0], [1], [0, 0, 1, 1], [], []>} : vector<4x32xbf16>, vector<32x128xbf16>, vector<4x128xf32> -> vector<4x128xf32>
    %c0_4 = arith.constant 0 : index
    %c0_5 = arith.constant 0 : index
    %5 = vector.load %arg4[%c0_4, %c0_5] : memref<4x1xf32, #tpu.memory_space<vmem>>, vector<4x1xf32>
    %6 = vector.broadcast %5 : vector<4x1xf32> to vector<4x128xf32>
    %7 = arith.addf %4, %6 : vector<4x128xf32>
    %c0_6 = arith.constant 0 : index
    %c0_7 = arith.constant 0 : index
    %8 = vector.load %arg5[%c0_6, %c0_7] : memref<4x32xbf16, #tpu.memory_space<vmem>>, vector<4x32xbf16>
    %cst_8 = arith.constant dense<0.000000e+00> : vector<4x128xf32>
    %9 = tpu.matmul %8, %2, %cst_8 {dimension_numbers = #tpu.dot_dimension_numbers<[1], [0], [0], [1], [0, 0, 1, 1], [], []>} : vector<4x32xbf16>, vector<32x128xbf16>, vector<4x128xf32> -> vector<4x128xf32>
    %c0_9 = arith.constant 0 : index
    %c0_10 = arith.constant 0 : index
    %10 = vector.load %arg6[%c0_9, %c0_10] : memref<4x1xf32, #tpu.memory_space<vmem>>, vector<4x1xf32>
    %11 = vector.broadcast %10 : vector<4x1xf32> to vector<4x128xf32>
    %12 = arith.addf %9, %11 : vector<4x128xf32>
    %c0_11 = arith.constant 0 : index
    %c0_12 = arith.constant 0 : index
    %13 = vector.load %arg7[%c0_11, %c0_12] : memref<32x32xbf16, #tpu.memory_space<vmem>>, vector<32x32xbf16>
    %cst_13 = arith.constant dense<0.000000e+00> : vector<32x128xf32>
    %14 = tpu.matmul %13, %2, %cst_13 {dimension_numbers = #tpu.dot_dimension_numbers<[1], [0], [0], [1], [0, 0, 1, 1], [], []>} : vector<32x32xbf16>, vector<32x128xbf16>, vector<32x128xf32> -> vector<32x128xf32>
    %c0_14 = arith.constant 0 : index
    %c0_15 = arith.constant 0 : index
    %15 = vector.load %arg8[%c0_14, %c0_15] : memref<32x1xf32, #tpu.memory_space<vmem>>, vector<32x1xf32>
    %16 = vector.broadcast %15 : vector<32x1xf32> to vector<32x128xf32>
    %17 = arith.addf %14, %16 : vector<32x128xf32>
    %18 = arith.truncf %7 : vector<4x128xf32> to vector<4x128xbf16>
    %c0_16 = arith.constant 0 : index
    %c0_17 = arith.constant 0 : index
    %c0_18 = arith.constant 0 : index
    %19 = vector.load %arg9[%c0_16, %c0_17, %c0_18] : memref<1x4x128xbf16, #tpu.memory_space<vmem>>, vector<1x4x128xbf16>
    %20 = vector.shape_cast %19 : vector<1x4x128xbf16> to vector<4x128xbf16>
    %21 = vector.shape_cast %18 : vector<4x128xbf16> to vector<1x4x128xbf16>
    tpu.vector_store %arg9[%c0_16, %c0_17, %c0_18], %21 {strides = array<i32>} : memref<1x4x128xbf16, #tpu.memory_space<vmem>>, vector<1x4x128xbf16>,
    %22 = arith.truncf %12 : vector<4x128xf32> to vector<4x128xbf16>
    %c0_19 = arith.constant 0 : index
    %c0_20 = arith.constant 0 : index
    %c0_21 = arith.constant 0 : index
    %23 = vector.load %arg10[%c0_19, %c0_20, %c0_21] : memref<1x4x128xbf16, #tpu.memory_space<vmem>>, vector<1x4x128xbf16>
    %24 = vector.shape_cast %23 : vector<1x4x128xbf16> to vector<4x128xbf16>
    %25 = vector.shape_cast %22 : vector<4x128xbf16> to vector<1x4x128xbf16>
    tpu.vector_store %arg10[%c0_19, %c0_20, %c0_21], %25 {strides = array<i32>} : memref<1x4x128xbf16, #tpu.memory_space<vmem>>, vector<1x4x128xbf16>,
    %26 = arith.truncf %17 : vector<32x128xf32> to vector<32x128xbf16>
    %c0_22 = arith.constant 0 : index
    %c0_23 = arith.constant 0 : index
    %c0_24 = arith.constant 0 : index
    %27 = vector.load %arg11[%c0_22, %c0_23, %c0_24] : memref<1x32x128xbf16, #tpu.memory_space<vmem>>, vector<1x32x128xbf16>
    %28 = vector.shape_cast %27 : vector<1x32x128xbf16> to vector<32x128xbf16>
    %29 = vector.shape_cast %26 : vector<32x128xbf16> to vector<1x32x128xbf16>
    tpu.vector_store %arg11[%c0_22, %c0_23, %c0_24], %29 {strides = array<i32>} : memref<1x32x128xbf16, #tpu.memory_space<vmem>>, vector<1x32x128xbf16>,
    return
  }
  func.func @transform_0(%arg0: i32, %arg1: i32) -> (i32, i32, i32) {
    %c0_i32 = arith.constant 0 : i32
    %c0_i32_0 = arith.constant 0 : i32
    return %arg0, %c0_i32, %arg1 : i32, i32, i32
  }
  func.func @transform_1(%arg0: i32, %arg1: i32) -> (i32, i32) {
    %c0_i32 = arith.constant 0 : i32
    %c0_i32_0 = arith.constant 0 : i32
    %c0_i32_1 = arith.constant 0 : i32
    return %c0_i32, %c0_i32_0 : i32, i32
  }
  func.func @transform_2(%arg0: i32, %arg1: i32) -> (i32, i32) {
    %c0_i32 = arith.constant 0 : i32
    %c0_i32_0 = arith.constant 0 : i32
    %c0_i32_1 = arith.constant 0 : i32
    return %c0_i32, %c0_i32_0 : i32, i32
  }
  func.func @transform_3(%arg0: i32, %arg1: i32) -> (i32, i32) {
    %c0_i32 = arith.constant 0 : i32
    %c0_i32_0 = arith.constant 0 : i32
    %c0_i32_1 = arith.constant 0 : i32
    return %c0_i32, %c0_i32_0 : i32, i32
  }
  func.func @transform_4(%arg0: i32, %arg1: i32) -> (i32, i32) {
    %c0_i32 = arith.constant 0 : i32
    %c0_i32_0 = arith.constant 0 : i32
    %c0_i32_1 = arith.constant 0 : i32
    return %c0_i32, %c0_i32_0 : i32, i32
  }
  func.func @transform_5(%arg0: i32, %arg1: i32) -> (i32, i32) {
    %c0_i32 = arith.constant 0 : i32
    %c0_i32_0 = arith.constant 0 : i32
    %c0_i32_1 = arith.constant 0 : i32
    return %c0_i32, %c0_i32_0 : i32, i32
  }
  func.func @transform_6(%arg0: i32, %arg1: i32) -> (i32, i32) {
    %c0_i32 = arith.constant 0 : i32
    %c0_i32_0 = arith.constant 0 : i32
    %c0_i32_1 = arith.constant 0 : i32
    return %c0_i32, %c0_i32_0 : i32, i32
  }
  func.func @transform_7(%arg0: i32, %arg1: i32) -> (i32, i32, i32) {
    %c0_i32 = arith.constant 0 : i32
    %c0_i32_0 = arith.constant 0 : i32
    return %arg0, %c0_i32, %arg1 : i32, i32, i32
  }
  func.func @transform_8(%arg0: i32, %arg1: i32) -> (i32, i32, i32) {
    %c0_i32 = arith.constant 0 : i32
    %c0_i32_0 = arith.constant 0 : i32
    return %arg0, %c0_i32, %arg1 : i32, i32, i32
  }
  func.func @transform_9(%arg0: i32, %arg1: i32) -> (i32, i32, i32) {
    %c0_i32 = arith.constant 0 : i32
    %c0_i32_0 = arith.constant 0 : i32
    return %arg0, %c0_i32, %arg1 : i32, i32, i32
  }
}

</mosaic_0001>

<bundles_post_ra>
// kernel: tpu_custom_call.1
= control target key start
LH: loop header
LB: loop body
LE: loop exit
PB: predicated region body
PF: predicated region fallthrough
CT: control target
= control target key end

     0   :  { %s1503_s0 = inlined_call_operand.hbm [shape: f32[2,32,128], index: 0, kind: input, shape index: {}]   ;;  %s1504_s1 = inlined_call_operand.vmem [shape: bf16[4,32], index: 1, kind: input, shape index: {}]   ;;  %s1505_s2 = inlined_call_operand.vmem [shape: f32[4,1], index: 2, kind: input, shape index: {}]   ;;  %s1506_s3 = inlined_call_operand.vmem [shape: bf16[4,32], index: 3, kind: input, shape index: {}]   ;;  %s1507_s4 = inlined_call_operand.vmem [shape: f32[4,1], index: 4, kind: input, shape index: {}]   ;;  %s1508_s5 = inlined_call_operand.vmem [shape: bf16[32,32], index: 5, kind: input, shape index: {}]   ;;  %s1509_s6 = inlined_call_operand.vmem [shape: f32[32,1], index: 6, kind: input, shape index: {}]   ;;  %s1510_s7 = inlined_call_operand.hbm [shape: bf16[2,4,128], index: 7, kind: output, shape index: {0}]   ;;  %s1511_s8 = inlined_call_operand.hbm [shape: bf16[2,4,128], index: 8, kind: output, shape index: {1}]   ;;  %s1512_s9 = inlined_call_operand.hbm [shape: bf16[2,32,128], index: 9, kind: output, shape index: {2}]  }
   0x1   :  { %1517 = sst [smem:[#allocation14_spill]] %s1503_s0 }
   0x2   :  { %1518 = sst [smem:[#allocation15_spill]] %s1504_s1 }
   0x3   :  { %15 = vsyncpa [#allocation3], 0 }
   0x4   :  { %17 = vsyncpa [#allocation3 + $0x1], 0 }
   0x5   :  { %18 = vsyncpa [#allocation4], 0 }
   0x6   :  { %20 = vsyncpa [#allocation4 + $0x1], 0 }
   0x7   :  { %21 = vsyncpa [#allocation7], 0 }
   0x8   :  { %23 = vsyncpa [#allocation7 + $0x1], 0  ;;  %s1216_s30 = smov 0   ;;  %s1218_s10 = smov 0  }
   0x9   :  { %s1220_s11 = smov 0   ;;  %s1222_s12 = smov 0  }
   0xa   :  { %s1224_s13 = smov 0   ;;  %s1226_s14 = smov 0  }
   0xb LB: > { %1519 = sst [smem:[#allocation12_spill]] %s1149_s13  ;;  %s1247_s15 = sadd.s32 4294967295, %s1153_s14   ;;  %s1153_s14 = sphi %s1226_s14, %s29_s14   ;;  %s1149_s13 = sphi %s1224_s13, %s1535_s13   ;;  %s1145_s12 = sphi %s1222_s12, %s1534_s12   ;;  %s1141_s11 = sphi %s1220_s11, %s1538_s11   ;;  %s1137_s10 = sphi %s1218_s10, %s1537_s10   ;;  %s1133_s30 = sphi %s1216_s30, %s1536_s30  }
   0xc   : > { %s1513_s16 = sadd.s32 4294967294, %s1153_s14   ;;  %s41_s17 = sadd.s32 1, %s1149_s13 }
   0xd   : > { %s50_s18 = sadd.s32 1, %s1141_s11  ;;  %p43_p0 = scmp.ge.s32.totalorder %s41_s17, 2 }
   0xe   : > { %p57_p1 = scmp.ne.s32.totalorder %s1141_s11, %s1137_s10  ;;  %p58_p2 = scmp.eq.s32.totalorder %s1153_s14, 0 }
   0xf   : > { %p63_p3 = scmp.ne.s32.totalorder %s1137_s10, %s1133_s30  ;;  %s1540_s17 = smov (%p43_p0, %s41_s17), 0 }
  0x10   : > { %1520 = sst [smem:[#allocation13_spill]] %s1540_s17  ;;  %p1259_p4 = por %p58_p2, %p57_p1 }
  0x11   : > { %p64_p5 = scmp.eq.s32.totalorder %s1247_s15, 0  ;;  %s45_s20 = ssub.s32 %s1149_s13, %s1540_s17 }
  0x12   : > { %p215_p6 = scmp.eq.s32.totalorder %s1247_s15, 1  ;;  %p48_p7 = scmp.eq.s32.totalorder %s45_s20, 0 }
  0x13   : > { %p1267_p8 = por %p64_p5, %p63_p3  ;;  %p221_p10 = scmp.eq.s32.totalorder %s1513_s16, 1 }
  0x14   : > { %p1271_p9 = por %p215_p6, %p57_p1  ;;  %p920_p13 = scmp.lt.s32.totalorder %s1153_s14, 2 }
  0x15   : > { %s1278_s23 = scalar_select %p48_p7, %s1141_s11, %s50_s18  }
  0x16   : > { %s1523_s22 = scalar_select %p1271_p9, 1, 0 }
  0x17   : > { %p1280_p11 = por %p221_p10, %p63_p3  ;;  %s315_s25 = sand.u32 1, %s1141_s11  }
  0x18   : > { %s820_s26 = sshll.u32 %s315_s25, 5  ;;  %s847_s27 = sshll.u32 %s1149_s13, 9 }
  0x19   : > { %s1524_s24 = scalar_select %p1280_p11, 1, 0 }
  0x1a   : > { %s1525_s0 = sld [smem:[#allocation14_spill]]  ;;  %s319_s18 = scalar_lea.vmem [#allocation2], %s820_s26 }
  0x1b   : > { %s327_s16 = sshll.u32 %s319_s18, 4  ;;  %p1297_p0 = pnand %p920_p13, %p1259_p4  ;;  %s1293_s16 = int_to_ptr.vmem [resolvable:$true] %s327_s16 }
  0x1c   : > { %s1302_s13 = scalar_lea.sflag [#allocation3], %s315_s25 }
  0x1d   : > { %p983_p3 = pneg %p1297_p0 }
  0x20   : > { %s1291_s20 = scalar_lea.hbm %s1525_s0, %s847_s27  ;;  %s986_s19 = scalar_lea.hbm %s1525_s0, 1024 }
  0x21   : > { %s981_s27 = scalar_lea.hbm %s1291_s20, 512  ;;  %p987_p4 = scmp.lt.u32.totalorder %s1291_s20, %s1525_s0 }
  0x22   : > { %p982_p2 = scmp.ne.s32.totalorder %s1291_s20, %s981_s27  ;;  %p988_p7 = scmp.lt.u32.totalorder %s986_s19, %s981_s27 }
  0x23   : > { %p990_p13 = scmp.lt.u32.totalorder %s981_s27, %s1291_s20 }
  0x24   : > { %p984_p5 = pnand %p983_p3, %p982_p2  ;;  %p989_p10 = por %p988_p7, %p987_p4 }
  0x26   : > { %p985_p6 = pneg %p984_p5  ;;  %p991_p12 = por %p990_p13, %p989_p10 }
  0x28   : > { %p992_p1 = pnand %p991_p12, %p985_p6 }
  0x2a   : > { %995 = shalt.err (!%p992_p1)
}
  0x2b   : > { %s996_s25 = scalar_lea.vmem %s1293_s16, 512  ;;  %s1155_s26 = smov [#allocation2]  }
  0x2c   : > { %p997_p2 = scmp.ne.s32.totalorder %s1293_s16, %s996_s25  ;;  %s1001_s28 = sshll.u32 %s1155_s26, 4  ;;  %s1002_s28 = int_to_ptr.vmem [resolvable:$false] %s1001_s28 }
  0x2d   : > { %s1003_s29 = scalar_lea.vmem %s1002_s28, 1024  ;;  %p1004_p9 = scmp.lt.s32.totalorder %s1293_s16, %s1002_s28 }
  0x2e   : > { %p999_p5 = pnand %p997_p2, %p983_p3  ;;  %p1005_p4 = scmp.lt.s32.totalorder %s1003_s29, %s996_s25 }
  0x30   : > { %p1000_p11 = pneg %p999_p5  ;;  %p1006_p7 = por %p1005_p4, %p1004_p9 }
  0x32   : > { %p1007_p10 = pnand %p1006_p7, %p1000_p11 }
  0x34   : > { %1010 = shalt.err (!%p1007_p10)
}
  0x35   : > { %s1156_s27 = smov 128   ;;  %s1157_s19 = smov 8  }
  0x36   : > { %909 = dma.hbm_to_vmem [thread:$0]  (!%p1297_p0), %s1291_s20, 512, %s1293_s16, %s1302_s13, %s1156_s27, %s1156_s27, %s1157_s19  }
  0x37   : > { %p335_p12 = scmp.lt.s32.totalorder %s1153_s14, 3  ;;  %p1527_p1 = scmp.ge.s32.totalorder %s1153_s14, 1 }
  0x39   : > { %p336_p3 = pnand %p1527_p1, %p335_p12 }
  0x3a   : > { %s1334_s18 = sand.u32 (!%p336_p3), 1, %s1137_s10  }
  0x3b   : > { %339 = sbr.rel (%p336_p3) target bundleno = 357 (0x165), region = 48  ;;  %s824_s25 = sshll.u32 (!%p336_p3), %s1334_s18, 5 }
  0x3c   : > { %s342_s26 = scalar_lea.sflag (!%p336_p3), [#allocation3], %s1334_s18  ;;  %s345_s28 = scalar_lea.vmem (!%p336_p3), [#allocation2], %s824_s25 }
  0x42   : > { %1120 = dma.done.wait (%p1267_p8), %s342_s26, 512  }
  0x43   : > { %1122 = vsyncadd (%p1267_p8), %s342_s26, 4294966784  ;;  %v1158_v0 = vmov 0.0   ;;  %vm1159_vm0 = vmmov 0   ;;  %v1160_v1 = vmov 0   ;;  %v391_v2 = vld [vmem:[%s345_s28] sm:$0xff]  ;;  %v392_v3 = vld [vmem:[%s345_s28 + $0x8] sm:$0xff] }
  0x44   : > { %874 = vmatprep.subr.bf16.mxu0 %v1158_v0  ;;  %882 = vmatprep.subr.bf16.mxu1 %v1158_v0  ;;  %v393_v4 = vld [vmem:[%s345_s28 + $0x10] sm:$0xff]  ;;  %v395_v5 = vpack.c.bf16 %v392_v3, %v391_v2  ;;  %v394_v6 = vld [vmem:[%s345_s28 + $0x18] sm:$0xff]  ;;  %v502_v8 = vld [vmem:[%s1509_s6] sm:$0xff]  ;;  %s1528_s1 = sld [smem:[#allocation15_spill]]  ;;  %vm404_vm1 = vcmask 261120   ;;  %s825_s26 = sshll.u32 %s1334_s18, 1 }
  0x45   : > { %878 = vmatprep.mubr.msk.bf16.mxu0 %vm1159_vm0, %v1158_v0  ;;  %886 = vmatprep.mubr.msk.bf16.mxu1 %vm1159_vm0, %v1158_v0  ;;  %v396_v7 = vpack.c.bf16 %v394_v6, %v393_v4  ;;  %v449_v9 = vld [vmem:[%s1507_s4] sm:$0xf]  ;;  %v503_v10 = vld [vmem:[%s1509_s6 + $0x8] sm:$0xff]  ;;  %v505_v15 = vld [vmem:[%s1509_s6 + $0x18] sm:$0xff]  ;;  %s620_s28 = sand.u32 1, %s1247_s15   ;;  %s841_s13 = sshll.u32 %s1145_s12, 5 }
  0x46   : > { %978 = vset.pattern.permute.xlu1 %v1160_v1  ;;  %977 = vset.pattern.permute.xlu0 %v1160_v1  ;;  %v398_v11 = vld [vmem:[%s1505_s2] sm:$0xf]  ;;  %v504_v16 = vld [vmem:[%s1509_s6 + $0x10] sm:$0xff]  ;;  %v980_v17 = vld [vmem:[%s1508_s5 + $0x8] sm:$0xff]   ;;  %s382_s16 = scalar_lea.vmem [#allocation6], %s825_s26  ;;  %s375_s20 = scalar_lea.vmem [#allocation5], %s825_s26 }
  0x47   : > { %875 = vmatpush3.bf16.msra.mxu0 %v395_v5  ;;  %883 = vmatpush3.bf16.msra.mxu1 %v395_v5  ;;  %v448_v13 = vld [vmem:[%s1506_s3] sm:$0x3]  ;;  %s654_s17 = sshll.u32 %s382_s16, 4  ;;  %s640_s29 = sshll.u32 %s375_s20, 4  ;;  %s1389_s17 = int_to_ptr.vmem [resolvable:$true] %s654_s17  ;;  %s1396_s29 = int_to_ptr.vmem [resolvable:$true] %s640_s29 }
  0x48   : > { %876 = vmatprep.subr.bf16.mxu0 %v1158_v0  ;;  %884 = vmatprep.subr.bf16.mxu1 %v1158_v0  ;;  %v979_v14 = vld [vmem:[%s1508_s5] sm:$0xff]   ;;  %s1387_s25 = scalar_lea.hbm %s1511_s8, %s841_s13  ;;  %s1394_s26 = scalar_lea.hbm %s1510_s7, %s841_s13 }
  0x49   : > { %508 = vperm.xlu1 %978, %v502_v8   ;;  %452 = vperm.xlu0 %977, %v449_v9   ;;  %s1398_s27 = scalar_lea.sflag [#allocation7], %s620_s28  ;;  %s1011_s19 = scalar_lea.vmem %s1389_s17, 32 }
  0x4a   : > { %v397_v12 = vld [vmem:[%s1528_s1] sm:$0x3]  ;;  %p1012_p8 = scmp.ne.s32.totalorder %s1389_s17, %s1011_s19  ;;  %p1529_p9 = scmp.ne.s32.totalorder %s1523_s22, 0 }
  0x4b   : > { %877 = vmatpush3.bf16.msra.mxu0 %v396_v7  ;;  %885 = vmatpush3.bf16.msra.mxu1 %v396_v7  ;;  %s1161_s21 = smov [#allocation6]  }
  0x4c   : > { %890 = vmatprep.subr.bf16.mxu0 %v395_v5  ;;  %p1013_p11 = pnand %p1012_p8, %p1529_p9  ;;  %s1015_s1 = sshll.u32 %s1161_s21, 4  ;;  %s1016_s1 = int_to_ptr.vmem [resolvable:$false] %s1015_s1 }
  0x4d   : > { %513 = vperm.xlu1 %978, %v503_v10   ;;  %401 = vperm.xlu0 %977, %v398_v11   ;;  %s1017_s0 = scalar_lea.vmem %s1016_s1, 64  ;;  %p1018_p6 = scmp.lt.s32.totalorder %s1389_s17, %s1016_s1 }
  0x4e   : > { %879 = vmatmul.mubr.msk.bf16.vlgmr.msra.gmra.mrb[0].mxu0 %vm404_vm1, %v397_v12  ;;  %887 = vmatmul.mubr.msk.bf16.vlgmr.msra.gmra.mrb[0].mxu1 %vm404_vm1, %v448_v13  ;;  %p1014_p0 = pneg %p1013_p11  ;;  %p1019_p13 = scmp.lt.s32.totalorder %s1017_s0, %s1011_s19 }
  0x4f   : > { %891 = vmatpush3.bf16.msra.mxu0 %v395_v5  ;;  %894 = vmatprep.mubr.msk.bf16.mxu0 %vm404_vm1, %v979_v14 }
  0x50   : > { %892 = vmatprep.subr.bf16.mxu0 %v396_v7  ;;  %p1020_p2 = por %p1019_p13, %p1018_p6 }
  0x51   : > { %523 = vperm.xlu1 %978, %v505_v15   ;;  %518 = vperm.xlu0 %977, %v504_v16  }
  0x52   : > { %p1021_p5 = pnand %p1020_p2, %p1014_p0 }
  0x53   : > { %893 = vmatpush3.bf16.msra.mxu0 %v396_v7 }
  0x56   : > { %895 = vmatmul.mubr.msk.bf16.vlgmr.msra.gmra.mrb[4].mxu0 %vm404_vm1, %v980_v17 }
  0xc8   : > { %v453_v18 = vpop.permute.xlu0 %452  ;;  %v1376_v19 = vpop.permute.xlu1 %508 }
  0xcc   : > { %v402_v20 = vpop.permute.xlu0 %401  ;;  %v1379_v21 = vpop.permute.xlu1 %513 }
 0x121   : > { %v442_v22 = vpop.f32.mrb[0].mxu0  ;;  %v492_v23 = vpop.f32.mrb[0].mxu1 }
 0x122   : > { %v443_v24 = vadd.f32 %v442_v22, %v402_v20  ;;  %v880_v25 = vpop.f32.mrb[1].mxu0  ;;  %v493_v26 = vadd.f32 %v492_v23, %v453_v18  ;;  %v888_v27 = vpop.f32.mrb[1].mxu1 }
 0x123   : > { %v445_v28 = vpop.f32.mrb[2].mxu0  ;;  %v495_v29 = vpop.f32.mrb[2].mxu1 }
 0x124   : > { %v591_v30 = vpack.c.bf16 %v443_v24, %v443_v24  ;;  %v881_v31 = vpop.f32.mrb[3].mxu0  ;;  %v593_v32 = vpack.c.bf16 %v493_v26, %v493_v26  ;;  %v889_v33 = vpop.f32.mrb[3].mxu1 }
 0x126   : > { %592 = vst [vmem:[%s375_s20] sm:$0x3] %v591_v30  ;;  %594 = vst [vmem:[%s382_s16] sm:$0x3] %v593_v32 }
 0x127   : > { %1024 = shalt.err (!%p1021_p5)
}
 0x128   : > { %s1025_s28 = scalar_lea.hbm %s1387_s25, 32  ;;  %s1029_s21 = scalar_lea.hbm %s1511_s8, 64 }
 0x129   : > { %p1026_p4 = scmp.ne.s32.totalorder %s1387_s25, %s1025_s28  ;;  %p1030_p12 = scmp.lt.u32.totalorder %s1387_s25, %s1511_s8 }
 0x12a   : > { %p1031_p1 = scmp.lt.u32.totalorder %s1029_s21, %s1025_s28  ;;  %p1033_p8 = scmp.lt.u32.totalorder %s1025_s28, %s1387_s25 }
 0x12b   : > { %p1027_p7 = pnand %p1026_p4, %p1529_p9 }
 0x12c   : > { %p1032_p3 = por %p1031_p1, %p1030_p12 }
 0x12d   : > { %p1028_p10 = pneg %p1027_p7 }
 0x12e   : > { %p1034_p11 = por %p1033_p8, %p1032_p3 }
 0x130   : > { %p1035_p0 = pnand %p1034_p11, %p1028_p10 }
 0x132   : > { %1038 = shalt.err (!%p1035_p0)
}
 0x133   : > { %901 = dma.vmem_to_hbm [thread:$0]  (%p1529_p9), %s1389_s17, 32, %s1387_s25, %s1398_s27  }
 0x134   : > { %s616_s15 = scalar_lea.sflag [#allocation4], %s1334_s18  ;;  %s1039_s19 = scalar_lea.vmem %s1396_s29, 32 }
 0x135   : > { %p1040_p6 = scmp.ne.s32.totalorder %s1396_s29, %s1039_s19  ;;  %s1162_s0 = smov [#allocation5]  }
 0x136   : > { %s1043_s28 = sshll.u32 %s1162_s0, 4  ;;  %s1044_s28 = int_to_ptr.vmem [resolvable:$false] %s1043_s28 }
 0x137   : > { %p1041_p13 = pnand %p1040_p6, %p1529_p9  ;;  %s1045_s13 = scalar_lea.vmem %s1044_s28, 64 }
 0x138   : > { %p1046_p5 = scmp.lt.s32.totalorder %s1396_s29, %s1044_s28  ;;  %p1047_p4 = scmp.lt.s32.totalorder %s1045_s13, %s1039_s19 }
 0x139   : > { %p1042_p2 = pneg %p1041_p13 }
 0x13a   : > { %p1048_p7 = por %p1047_p4, %p1046_p5 }
 0x13c   : > { %p1049_p10 = pnand %p1048_p7, %p1042_p2 }
 0x13e   : > { %1052 = shalt.err (!%p1049_p10)
}
 0x13f   : > { %s1053_s17 = scalar_lea.hbm %s1394_s26, 32  ;;  %s1057_s21 = scalar_lea.hbm %s1510_s7, 64 }
 0x140   : > { %p1054_p12 = scmp.ne.s32.totalorder %s1394_s26, %s1053_s17  ;;  %p1058_p8 = scmp.lt.u32.totalorder %s1394_s26, %s1510_s7 }
 0x141   : > { %p1059_p11 = scmp.lt.u32.totalorder %s1057_s21, %s1053_s17  ;;  %p1061_p6 = scmp.lt.u32.totalorder %s1053_s17, %s1394_s26 }
 0x142   : > { %p1055_p1 = pnand %p1054_p12, %p1529_p9 }
 0x143   : > { %p1060_p0 = por %p1059_p11, %p1058_p8 }
 0x144   : > { %p1056_p3 = pneg %p1055_p1 }
 0x145   : > { %p1062_p13 = por %p1061_p6, %p1060_p0 }
 0x147   : > { %p1063_p2 = pnand %p1062_p13, %p1056_p3 }
 0x149   : > { %1066 = shalt.err (!%p1063_p2)
}
 0x14a   : > { %900 = dma.vmem_to_hbm [thread:$0]  (%p1529_p9), %s1396_s29, 32, %s1394_s26, %s616_s15   ;;  %v896_v34 = vpop.f32.mrb[4].mxu0  ;;  %v524_v35 = vpop.permute.xlu1 %523 }
 0x14b   : > { %v576_v36 = vpop.f32.mrb[5].mxu0  ;;  %v519_v37 = vpop.permute.xlu0 %518  ;;  %s1530_s19 = sshll.u32 %s1334_s18, 4  ;;  %s852_s13 = sshll.u32 %s1145_s12, 8 }
 0x14c   : > { %v897_v38 = vpop.f32.mrb[6].mxu0  ;;  %s389_s0 = scalar_lea.vmem [#allocation8], %s1530_s19  ;;  %v585_v39 = vadd.f32 %v896_v34, %v519_v37  ;;  %v577_v42 = vadd.f32 %v576_v36, %v1376_v19  ;;  %s1454_s18 = scalar_lea.hbm %s1512_s9, %s852_s13 }
 0x14d   : > { %s668_s28 = sshll.u32 %s389_s0, 4  ;;  %v588_v40 = vadd.f32 %v897_v38, %v524_v35  ;;  %v579_v41 = vpop.f32.mrb[7].mxu0  ;;  %s1163_s15 = smov [#allocation8]   ;;  %s1449_s28 = int_to_ptr.vmem [resolvable:$true] %s668_s28 }
 0x14e   : > { %v580_v43 = vadd.f32 %v579_v41, %v1379_v21  ;;  %s1067_s12 = scalar_lea.vmem %s1449_s28, 256  ;;  %s1071_s17 = sshll.u32 %s1163_s15, 4  ;;  %s1072_s17 = int_to_ptr.vmem [resolvable:$false] %s1071_s17 }
 0x14f   : > { %v861_v44 = vpack.c.bf16 %v588_v40, %v585_v39  ;;  %p1068_p5 = scmp.ne.s32.totalorder %s1449_s28, %s1067_s12  ;;  %s1073_s25 = scalar_lea.vmem %s1072_s17, 512 }
 0x150   : > { %v856_v45 = vpack.c.bf16 %v580_v43, %v577_v42  ;;  %p1074_p10 = scmp.lt.s32.totalorder %s1449_s28, %s1072_s17  ;;  %p1075_p12 = scmp.lt.s32.totalorder %s1073_s25, %s1067_s12 }
 0x151   : > { %863 = vst [vmem:[%s389_s0 + $0x8] sm:$0xff] %v861_v44   ;;  %p1069_p4 = pnand %p1068_p5, %p1529_p9 }
 0x152   : > { %857 = vst [vmem:[%s389_s0] sm:$0xff] %v856_v45   ;;  %p1076_p1 = por %p1075_p12, %p1074_p10 }
 0x153   : > { %p1070_p7 = pneg %p1069_p4 }
 0x155   : > { %p1077_p3 = pnand %p1076_p1, %p1070_p7 }
 0x157   : > { %1080 = shalt.err (!%p1077_p3)
}
 0x158   : > { %s1081_s16 = scalar_lea.hbm %s1454_s18, 256  ;;  %s1085_s1 = scalar_lea.hbm %s1512_s9, 512 }
 0x159   : > { %p1082_p8 = scmp.ne.s32.totalorder %s1454_s18, %s1081_s16  ;;  %p1086_p6 = scmp.lt.u32.totalorder %s1454_s18, %s1512_s9 }
 0x15a   : > { %p1087_p13 = scmp.lt.u32.totalorder %s1085_s1, %s1081_s16  ;;  %p1089_p5 = scmp.lt.u32.totalorder %s1081_s16, %s1454_s18 }
 0x15b   : > { %p1083_p11 = pnand %p1082_p8, %p1529_p9 }
 0x15c   : > { %p1088_p2 = por %p1087_p13, %p1086_p6 }
 0x15d   : > { %p1084_p0 = pneg %p1083_p11 }
 0x15e   : > { %p1090_p4 = por %p1089_p5, %p1088_p2 }
 0x160   : > { %p1091_p7 = pnand %p1090_p4, %p1084_p0 }
 0x162   : > { %1094 = shalt.err (!%p1091_p7)
}
 0x163   : > { %s1164_s13 = smov 64   ;;  %s1165_s29 = smov 4  }
 0x164   : > { %902 = dma.vmem_to_hbm [thread:$0]  (%p1529_p9), %s1449_s28, 256, %s1454_s18, %s1398_s27, %s1164_s13, %s1164_s13, %s1165_s29  }
 0x165 PF: > { %s683_s26 = sand.u32 1, %s1133_s30   ;;  %p1531_p10 = scmp.ne.s32.totalorder %s1524_s24, 0 }
 0x166   : > { %p1532_p12 = scmp.ge.s32.totalorder %s1153_s14, 2  ;;  %s684_s12 = scalar_lea.sflag [#allocation4], %s683_s26 }
 0x168   : > { %p911_p1 = pnand %p1532_p12, %p1531_p10 }
 0x16a   : > { %1124 = dma.done.wait (!%p911_p1), %s684_s12, 32  }
 0x16b   : > { %1126 = vsyncadd (!%p911_p1), %s684_s12, 4294967264  ;;  %s1533_s15 = sadd.s32 4294967294, %s1153_s14  }
 0x16c   : > { %s692_s17 = sand.u32 1, %s1533_s15  }
 0x16d   : > { %s693_s25 = scalar_lea.sflag [#allocation7], %s692_s17 }
 0x16e   : > { %1128 = dma.done.wait (!%p911_p1), %s693_s25, 288  }
 0x16f   : > { %1130 = vsyncadd (!%p911_p1), %s693_s25, 4294967008  ;;  %s29_s14 = sadd.s32 1, %s1153_s14   ;;  %s1534_s12 = sld [smem:[#allocation12_spill]] }
 0x170   : > { %p26_p9 = scmp.ge.s32.totalorder %s29_s14, 4   ;;  %s1535_s13 = sld [smem:[#allocation13_spill]] }
 0x171   : > { %s1536_s30 = smov %s1137_s10  ;;  %s1537_s10 = smov %s1141_s11 }
 0x172   : > { %s1538_s11 = smov %s1278_s23  ;;  %28 = sbr.rel (!%p26_p9) target bundleno = 11 (0xb), region = 125 }
 0x179   :  { %707 = vsyncpa [#allocation3], 1 }
 0x17a   :  { %709 = vsyncpa [#allocation3 + $0x1], 1 }
 0x17b   :  { %710 = vsyncpa [#allocation4], 1 }
 0x17c   :  { %712 = vsyncpa [#allocation4 + $0x1], 1 }
 0x17d   :  { %713 = vsyncpa [#allocation7], 1 }
 0x17e   :  { %715 = vsyncpa [#allocation7 + $0x1], 1 }

</bundles_post_ra>
